<compile_context>
chip_gen: v5e
topology: v5e:2x2
jax: 0.10.0
libtpu: 0.0.40
codegen_flags: <defaults>
</compile_context>

<pallas_src>
import jax
import jax.numpy as jnp
import numpy as np
from jax.experimental import pallas as pl
from jax.experimental.pallas import tpu as pltpu

# --- config matching TextCNNClassifier defaults (small shapes) --------------
NUM_CLASS    = 4
VOCAB_SIZE   = 50
EMB_DIM      = 32          # emb_dim
NUM_FILTERS  = 10          # num_filters
FC_HID_DIM   = 32          # fc_hid_dim
WIN_SIZE     = 3           # win_size_list defaults to [3]
NUM_CHANNELS = 1
BATCH        = 2
SEQ_LEN      = 16

CONV_T = SEQ_LEN - WIN_SIZE + 1                 # 14 valid conv positions / batch
T_PAD  = ((CONV_T + 7) // 8) * 8                # 16: sublane-aligned rows / batch
assert T_PAD == SEQ_LEN, "flat row indexing below relies on T_PAD == SEQ_LEN"
N_ROWS = BATCH * T_PAD                          # 32 flattened (batch, time) rows
# ids column padded by >= WIN_SIZE-1 extra (-1) rows so every shifted window
# read stays in-bounds; round up to a sublane multiple.
IDS_ROWS = ((N_ROWS + WIN_SIZE - 1 + 7) // 8) * 8   # 40


def textcnn_kernel(ids_ref, ew_ref, bconv_ref, wfc_ref, bfc_ref,
                   wout_ref, bout_ref, out_ref):
    """Fused: one-hot embedding+conv matmuls -> tanh -> maxpool -> fc -> tanh
    -> output fc -> softmax.  Single invocation, no grid, no scratch."""
    # Vocab iota for the vectorized id-vs-iota compare (VPU).
    viota = jax.lax.broadcasted_iota(jnp.int32, (N_ROWS, VOCAB_SIZE), 1)

    # --- embedding + conv as one-hot MXU matmuls ------------------------------
    # conv[b*T+t, f] = sum_k ew[k, ids[b, t+k], f]   (ew[k] = emb_table @ W_k)
    conv = None
    for k in range(WIN_SIZE):                                  # static, unrolled (K=3)
        ids_k = ids_ref[pl.ds(k, N_ROWS), :]                   # (N_ROWS, 1) shifted read
        onehot = (ids_k == viota).astype(jnp.float32)          # (N_ROWS, VOCAB) compare
        part = jnp.dot(onehot, ew_ref[k],
                       preferred_element_type=jnp.float32)     # (N_ROWS, F) MXU
        conv = part if conv is None else conv + part
    conv = jnp.tanh(conv + bconv_ref[...])                     # values in (-1, 1)

    # --- mask padded / cross-batch-contaminated rows, then max-pool over time --
    row_t = jax.lax.broadcasted_iota(jnp.int32, conv.shape, 0) % T_PAD
    conv = jnp.where(row_t < CONV_T, conv, jnp.float32(-2.0))  # tanh output > -1 always
    pooled = jnp.max(conv.reshape(BATCH, T_PAD, NUM_FILTERS), axis=1)   # (B, F)

    # --- TextCNNLayer fc -> outer tanh -> output fc ----------------------------
    hid = jnp.tanh(jnp.dot(pooled, wfc_ref[...],
                           preferred_element_type=jnp.float32) + bfc_ref[...])
    logits = jnp.dot(hid, wout_ref[...],
                     preferred_element_type=jnp.float32) + bout_ref[...]

    # --- exact softmax(dim=-1); pack both outputs into one store ---------------
    m = jnp.max(logits, axis=-1, keepdims=True)
    e = jnp.exp(logits - m)
    smax = e / jnp.sum(e, axis=-1, keepdims=True)
    out_ref[...] = jnp.concatenate([logits, smax], axis=-1)    # (B, 2*C)


def textcnn_forward(input_ids, emb_table, w_conv_kef, b_conv, w_fc, b_fc,
                    w_out, b_out):
    """Single pallas_call; ids enter as a tiny VMEM int32 column, and the
    embedding table is folded into the conv weights once (ew[k] = emb @ W_k)."""
    hp = jax.lax.Precision.HIGHEST
    # Fold embedding into conv weights: (K, VOCAB, F).  One-time weight prep.
    ew = jnp.einsum('ve,kef->kvf', emb_table, w_conv_kef, precision=hp)

    # Flatten ids row-major (b*T + t) and pad with -1 (matches no vocab entry)
    # so the k-shifted window reads inside the kernel never go out of bounds.
    ids_flat = input_ids.reshape(N_ROWS, 1).astype(jnp.int32)
    ids_pad = jnp.concatenate(
        [ids_flat, jnp.full((IDS_ROWS - N_ROWS, 1), -1, jnp.int32)], axis=0)

    vmem = lambda: pl.BlockSpec(memory_space=pltpu.MemorySpace.VMEM)
    packed = pl.pallas_call(
        textcnn_kernel,
        out_shape=jax.ShapeDtypeStruct((BATCH, 2 * NUM_CLASS), jnp.float32),
        in_specs=[vmem() for _ in range(7)],
        out_specs=vmem(),
    )(ids_pad, ew, b_conv, w_fc, b_fc, w_out, b_out)
    return packed[:, :NUM_CLASS], packed[:, NUM_CLASS:]


def reference_forward(input_ids, emb_table, w_conv_kef, b_conv, w_fc, b_fc,
                      w_out, b_out):
    """Plain-JAX reference with identical math (embedding included)."""
    hp = jax.lax.Precision.HIGHEST
    emb = emb_table[input_ids]                               # (B, L, E)
    K = w_conv_kef.shape[0]
    T = emb.shape[1] - K + 1
    conv = sum(jnp.einsum('ble,ef->blf', emb[:, k:k + T, :], w_conv_kef[k],
                          precision=hp)
               for k in range(K))
    conv = jnp.tanh(conv + b_conv)
    pooled = jnp.max(conv, axis=1)
    hid = jnp.tanh(jnp.dot(pooled, w_fc, precision=hp) + b_fc)
    logits = jnp.dot(hid, w_out, precision=hp) + b_out
    return logits, jax.nn.softmax(logits, axis=-1)


if __name__ == "__main__":
    key = jax.random.PRNGKey(0)
    k_emb, k_conv, k_fc, k_out, k_ids = jax.random.split(key, 5)

    # Deterministic synthetic parameters (shapes follow the module __init__).
    emb_table = 0.1 * jax.random.normal(k_emb, (VOCAB_SIZE, EMB_DIM), jnp.float32)
    # PyTorch Conv2d weight (F, 1, K, E) -> (K, E, F)
    w_conv_pt = 0.1 * jax.random.normal(
        k_conv, (NUM_FILTERS, NUM_CHANNELS, WIN_SIZE, EMB_DIM), jnp.float32)
    w_conv_kef = jnp.transpose(w_conv_pt[:, 0], (1, 2, 0))            # (K, E, F)
    b_conv = 0.01 * jnp.arange(NUM_FILTERS, dtype=jnp.float32).reshape(1, NUM_FILTERS)
    # PyTorch Linear weight (out, in) -> kernel layout (in, out)
    w_fc = 0.1 * jax.random.normal(
        k_fc, (NUM_FILTERS * 1, FC_HID_DIM), jnp.float32)   # concat of one win size
    b_fc = 0.01 * jnp.arange(FC_HID_DIM, dtype=jnp.float32).reshape(1, FC_HID_DIM)
    w_out = 0.1 * jax.random.normal(k_out, (FC_HID_DIM, NUM_CLASS), jnp.float32)
    b_out = 0.01 * jnp.arange(NUM_CLASS, dtype=jnp.float32).reshape(1, NUM_CLASS)

    # Inputs (token ids; the vocab lookup happens INSIDE the kernel via one-hot matmuls).
    input_ids = jax.random.randint(k_ids, (BATCH, SEQ_LEN), 0, VOCAB_SIZE)

    logits, softmax_pred = textcnn_forward(
        input_ids, emb_table, w_conv_kef, b_conv, w_fc, b_fc, w_out, b_out)
    jax.block_until_ready((logits, softmax_pred))

    ref_logits, ref_softmax = reference_forward(
        input_ids, emb_table, w_conv_kef, b_conv, w_fc, b_fc, w_out, b_out)

    np.testing.assert_allclose(np.asarray(logits), np.asarray(ref_logits),
                               rtol=1e-4, atol=1e-5)
    np.testing.assert_allclose(np.asarray(softmax_pred), np.asarray(ref_softmax),
                               rtol=1e-4, atol=1e-5)
    assert softmax_pred.shape == (BATCH, NUM_CLASS)

    print("KERNEL_OK")
</pallas_src>

<mosaic_0001>
module attributes {stable_mosaic.version = 11 : i64} {
  func.func @textcnn_kernel(%arg0: memref<40x1xi32, #tpu.memory_space<vmem>>, %arg1: memref<3x50x10xf32, #tpu.memory_space<vmem>>, %arg2: memref<1x10xf32, #tpu.memory_space<vmem>>, %arg3: memref<10x32xf32, #tpu.memory_space<vmem>>, %arg4: memref<1x32xf32, #tpu.memory_space<vmem>>, %arg5: memref<32x4xf32, #tpu.memory_space<vmem>>, %arg6: memref<1x4xf32, #tpu.memory_space<vmem>>, %arg7: memref<2x8xf32, #tpu.memory_space<vmem>>) attributes {dimension_semantics = [], scalar_prefetch = 0 : i64, scratch_operands = 0 : i64, tpu.core_type = #tpu.core_type<tc>} {
    %0 = tpu.iota {dimensions = array<i32: 1>} : vector<32x50xi32>
    %c0 = arith.constant 0 : index
    %c0_0 = arith.constant 0 : index
    %1 = vector.load %arg0[%c0, %c0_0] : memref<40x1xi32, #tpu.memory_space<vmem>>, vector<32x1xi32>
    %2 = vector.broadcast %1 : vector<32x1xi32> to vector<32x50xi32>
    %3 = arith.cmpi eq, %2, %0 : vector<32x50xi32>
    %4 = arith.extui %3 : vector<32x50xi1> to vector<32x50xi32>
    %5 = arith.sitofp %4 : vector<32x50xi32> to vector<32x50xf32>
    %c0_1 = arith.constant 0 : index
    %c0_2 = arith.constant 0 : index
    %c0_3 = arith.constant 0 : index
    %6 = vector.load %arg1[%c0_1, %c0_2, %c0_3] : memref<3x50x10xf32, #tpu.memory_space<vmem>>, vector<1x50x10xf32>
    %7 = vector.shape_cast %6 : vector<1x50x10xf32> to vector<50x10xf32>
    %cst = arith.constant dense<0.000000e+00> : vector<32x10xf32>
    %8 = tpu.matmul %5, %7, %cst {dimension_numbers = #tpu.dot_dimension_numbers<[1], [0], [0], [1], [0, 0, 1, 1], [], []>} : vector<32x50xf32>, vector<50x10xf32>, vector<32x10xf32> -> vector<32x10xf32>
    %c1 = arith.constant 1 : index
    %c0_4 = arith.constant 0 : index
    %9 = vector.load %arg0[%c1, %c0_4] : memref<40x1xi32, #tpu.memory_space<vmem>>, vector<32x1xi32>
    %10 = vector.broadcast %9 : vector<32x1xi32> to vector<32x50xi32>
    %11 = arith.cmpi eq, %10, %0 : vector<32x50xi32>
    %12 = arith.extui %11 : vector<32x50xi1> to vector<32x50xi32>
    %13 = arith.sitofp %12 : vector<32x50xi32> to vector<32x50xf32>
    %c1_5 = arith.constant 1 : index
    %c0_6 = arith.constant 0 : index
    %c0_7 = arith.constant 0 : index
    %14 = vector.load %arg1[%c1_5, %c0_6, %c0_7] : memref<3x50x10xf32, #tpu.memory_space<vmem>>, vector<1x50x10xf32>
    %15 = vector.shape_cast %14 : vector<1x50x10xf32> to vector<50x10xf32>
    %cst_8 = arith.constant dense<0.000000e+00> : vector<32x10xf32>
    %16 = tpu.matmul %13, %15, %cst_8 {dimension_numbers = #tpu.dot_dimension_numbers<[1], [0], [0], [1], [0, 0, 1, 1], [], []>} : vector<32x50xf32>, vector<50x10xf32>, vector<32x10xf32> -> vector<32x10xf32>
    %17 = arith.addf %8, %16 : vector<32x10xf32>
    %c2 = arith.constant 2 : index
    %c0_9 = arith.constant 0 : index
    %18 = vector.load %arg0[%c2, %c0_9] : memref<40x1xi32, #tpu.memory_space<vmem>>, vector<32x1xi32>
    %19 = vector.broadcast %18 : vector<32x1xi32> to vector<32x50xi32>
    %20 = arith.cmpi eq, %19, %0 : vector<32x50xi32>
    %21 = arith.extui %20 : vector<32x50xi1> to vector<32x50xi32>
    %22 = arith.sitofp %21 : vector<32x50xi32> to vector<32x50xf32>
    %c2_10 = arith.constant 2 : index
    %c0_11 = arith.constant 0 : index
    %c0_12 = arith.constant 0 : index
    %23 = vector.load %arg1[%c2_10, %c0_11, %c0_12] : memref<3x50x10xf32, #tpu.memory_space<vmem>>, vector<1x50x10xf32>
    %24 = vector.shape_cast %23 : vector<1x50x10xf32> to vector<50x10xf32>
    %cst_13 = arith.constant dense<0.000000e+00> : vector<32x10xf32>
    %25 = tpu.matmul %22, %24, %cst_13 {dimension_numbers = #tpu.dot_dimension_numbers<[1], [0], [0], [1], [0, 0, 1, 1], [], []>} : vector<32x50xf32>, vector<50x10xf32>, vector<32x10xf32> -> vector<32x10xf32>
    %26 = arith.addf %17, %25 : vector<32x10xf32>
    %c0_14 = arith.constant 0 : index
    %c0_15 = arith.constant 0 : index
    %27 = vector.load %arg2[%c0_14, %c0_15] : memref<1x10xf32, #tpu.memory_space<vmem>>, vector<1x10xf32>
    %28 = vector.broadcast %27 : vector<1x10xf32> to vector<32x10xf32>
    %29 = arith.addf %26, %28 : vector<32x10xf32>
    %30 = math.tanh %29 : vector<32x10xf32>
    %31 = tpu.iota {dimensions = array<i32: 0>} : vector<32x10xi32>
    %c16_i32 = arith.constant 16 : i32
    %c0_i32 = arith.constant 0 : i32
    %32 = arith.cmpi eq, %c16_i32, %c0_i32 : i32
    %c1_i32 = arith.constant 1 : i32
    %33 = arith.select %32, %c1_i32, %c16_i32 : i32
    %34 = vector.broadcast %33 : i32 to vector<32x10xi32>
    %35 = arith.remsi %31, %34 : vector<32x10xi32>
    %c0_i32_16 = arith.constant 0 : i32
    %36 = vector.broadcast %c0_i32_16 : i32 to vector<32x10xi32>
    %37 = arith.cmpi ne, %35, %36 : vector<32x10xi32>
    %c0_i32_17 = arith.constant 0 : i32
    %38 = vector.broadcast %c0_i32_17 : i32 to vector<32x10xi32>
    %39 = arith.cmpi slt, %35, %38 : vector<32x10xi32>
    %c0_i32_18 = arith.constant 0 : i32
    %40 = arith.cmpi slt, %33, %c0_i32_18 : i32
    %41 = vector.broadcast %40 : i1 to vector<32x10xi1>
    %42 = vector.broadcast %41 : vector<32x10xi1> to vector<32x10xi1>
    %43 = arith.xori %39, %42 : vector<32x10xi1>
    %44 = arith.andi %43, %37 : vector<32x10xi1>
    %45 = vector.broadcast %33 : i32 to vector<32x10xi32>
    %46 = arith.addi %35, %45 : vector<32x10xi32>
    %47 = arith.select %44, %46, %35 : vector<32x10xi1>, vector<32x10xi32>
    %c14_i32 = arith.constant 14 : i32
    %48 = vector.broadcast %c14_i32 : i32 to vector<32x10xi32>
    %49 = arith.cmpi slt, %47, %48 : vector<32x10xi32>
    %cst_19 = arith.constant -2.000000e+00 : f32
    %50 = vector.broadcast %cst_19 : f32 to vector<32x10xf32>
    %51 = arith.select %49, %30, %50 : vector<32x10xi1>, vector<32x10xf32>
    %52 = vector.shape_cast %51 : vector<32x10xf32> to vector<2x16x10xf32>
    %cst_20 = arith.constant dense<0xFF800000> : vector<2x10xf32>
    %53 = vector.multi_reduction <maximumf>, %52, %cst_20 [1] : vector<2x16x10xf32> to vector<2x10xf32>
    %c0_21 = arith.constant 0 : index
    %c0_22 = arith.constant 0 : index
    %54 = vector.load %arg3[%c0_21, %c0_22] : memref<10x32xf32, #tpu.memory_space<vmem>>, vector<10x32xf32>
    %cst_23 = arith.constant dense<0.000000e+00> : vector<2x32xf32>
    %55 = tpu.matmul %53, %54, %cst_23 {dimension_numbers = #tpu.dot_dimension_numbers<[1], [0], [0], [1], [0, 0, 1, 1], [], []>} : vector<2x10xf32>, vector<10x32xf32>, vector<2x32xf32> -> vector<2x32xf32>
    %c0_24 = arith.constant 0 : index
    %c0_25 = arith.constant 0 : index
    %56 = vector.load %arg4[%c0_24, %c0_25] : memref<1x32xf32, #tpu.memory_space<vmem>>, vector<1x32xf32>
    %57 = vector.broadcast %56 : vector<1x32xf32> to vector<2x32xf32>
    %58 = arith.addf %55, %57 : vector<2x32xf32>
    %59 = math.tanh %58 : vector<2x32xf32>
    %c0_26 = arith.constant 0 : index
    %c0_27 = arith.constant 0 : index
    %60 = vector.load %arg5[%c0_26, %c0_27] : memref<32x4xf32, #tpu.memory_space<vmem>>, vector<32x4xf32>
    %cst_28 = arith.constant dense<0.000000e+00> : vector<2x4xf32>
    %61 = tpu.matmul %59, %60, %cst_28 {dimension_numbers = #tpu.dot_dimension_numbers<[1], [0], [0], [1], [0, 0, 1, 1], [], []>} : vector<2x32xf32>, vector<32x4xf32>, vector<2x4xf32> -> vector<2x4xf32>
    %c0_29 = arith.constant 0 : index
    %c0_30 = arith.constant 0 : index
    %62 = vector.load %arg6[%c0_29, %c0_30] : memref<1x4xf32, #tpu.memory_space<vmem>>, vector<1x4xf32>
    %63 = vector.broadcast %62 : vector<1x4xf32> to vector<2x4xf32>
    %64 = arith.addf %61, %63 : vector<2x4xf32>
    %cst_31 = arith.constant dense<0xFF800000> : vector<2xf32>
    %65 = vector.multi_reduction <maximumf>, %64, %cst_31 [1] : vector<2x4xf32> to vector<2xf32>
    %66 = vector.shape_cast %65 : vector<2xf32> to vector<2x1xf32>
    %67 = vector.broadcast %66 : vector<2x1xf32> to vector<2x4xf32>
    %68 = arith.subf %64, %67 : vector<2x4xf32>
    %69 = math.exp %68 : vector<2x4xf32>
    %cst_32 = arith.constant dense<0.000000e+00> : vector<2xf32>
    %70 = vector.multi_reduction <add>, %69, %cst_32 [1] : vector<2x4xf32> to vector<2xf32>
    %71 = vector.shape_cast %70 : vector<2xf32> to vector<2x1xf32>
    %72 = vector.broadcast %71 : vector<2x1xf32> to vector<2x4xf32>
    %73 = arith.divf %69, %72 : vector<2x4xf32>
    %74 = tpu.concatenate %64, %73 in 1 : vector<2x4xf32>, vector<2x4xf32> -> vector<2x8xf32>
    %c0_33 = arith.constant 0 : index
    %c0_34 = arith.constant 0 : index
    %75 = vector.load %arg7[%c0_33, %c0_34] : memref<2x8xf32, #tpu.memory_space<vmem>>, vector<2x8xf32>
    tpu.vector_store %arg7[%c0_33, %c0_34], %74 {strides = array<i32>} : memref<2x8xf32, #tpu.memory_space<vmem>>, vector<2x8xf32>,
    return
  }
}

</mosaic_0001>

<bundles_post_ra>
// kernel: tpu_custom_call.1
= control target key start
LH: loop header
LB: loop body
LE: loop exit
PB: predicated region body
PF: predicated region fallthrough
CT: control target
= control target key end

     0   :  { %v577_v2 = vmov 0   ;;  %s771_s0 = inlined_call_operand.vmem [shape: s32[40,1], index: 0, kind: input, shape index: {}]   ;;  %s772_s1 = inlined_call_operand.vmem [shape: f32[3,50,10], index: 1, kind: input, shape index: {}]   ;;  %s773_s2 = inlined_call_operand.vmem [shape: f32[1,10], index: 2, kind: input, shape index: {}]   ;;  %s774_s3 = inlined_call_operand.vmem [shape: f32[10,32], index: 3, kind: input, shape index: {}]   ;;  %s775_s4 = inlined_call_operand.vmem [shape: f32[1,32], index: 4, kind: input, shape index: {}]   ;;  %s776_s5 = inlined_call_operand.vmem [shape: f32[32,4], index: 5, kind: input, shape index: {}]   ;;  %s777_s6 = inlined_call_operand.vmem [shape: f32[1,4], index: 6, kind: input, shape index: {}]   ;;  %s778_s7 = inlined_call_operand.hbm [shape: f32[2,8], index: 7, kind: output, shape index: {}]  }
   0x1   :  { %v64_v0 = vld [vmem:[%s771_s0 + $0x1] sm:$0xff]  ;;  %532 = vset.pattern.permute.xlu1 %v577_v2  ;;  %531 = vset.pattern.permute.xlu0 %v577_v2 }
   0x2   :  { %v190_v1 = vld [vmem:[%s771_s0 + $0x2] sm:$0xff]  ;;  %69 = vperm.xlu1 %532, %v64_v0   ;;  %533 = vset.pattern.permute.xlu2 %v577_v2 }
   0x3   :  { %v30_v3 = vld [vmem:[%s771_s0 + $0x8] sm:$0xff]  ;;  %195 = vperm.xlu0 %531, %v190_v1  }
   0x4   :  { %37 = vperm.xlu2 %533, %v30_v3  }
   0x5   :  { %12 = vsyncpa [#allocation3], 0  ;;  %v191_v4 = vld [vmem:[%s771_s0 + $0xa] sm:$0xff]  ;;  %v29_v5 = vld [vmem:[%s771_s0] sm:$0xff]  ;;  %vm113_vm0 = vcmask 1041408   ;;  %v27_v35 = vlaneseq  ;;  %vm100_vm1 = vcmask 408576  }
   0x6   :  { %v65_v6 = vld [vmem:[%s771_s0 + $0x9] sm:$0xff]  ;;  %v192_v8 = vld [vmem:[%s771_s0 + $0x12] sm:$0xff]  ;;  %v193_v11 = vld [vmem:[%s771_s0 + $0x1a] sm:$0xff]  ;;  %v578_v40 = vmov 0.0   ;;  %vm347_vm15 = vcmask 80896   ;;  %s474_s12 = sshll.u32 %s778_s7, 4  ;;  %s475_s12 = int_to_ptr.hbm [resolvable:$true] %s474_s12 }
   0x7   :  { %v31_v7 = vld [vmem:[%s771_s0 + $0x10] sm:$0xff]  ;;  %v32_v10 = vld [vmem:[%s771_s0 + $0x18] sm:$0xff]  ;;  %v497_v13 = vld [vmem:[%s772_s1 + $0x68] sm:$0x3]  ;;  %v28_v36 = vand.u32 127, %v27_v35 }
   0x8   :  { %v66_v9 = vld [vmem:[%s771_s0 + $0x11] sm:$0xff]  ;;  %v67_v12 = vld [vmem:[%s771_s0 + $0x19] sm:$0xff]  ;;  %498 = vmatpush.msk.msra.mxu0 %vm113_vm0, %v497_v13  ;;  %v515_v20 = vld [vmem:[%s772_s1 + $0x88] sm:$0xff] }
   0x9   :  { %v518_v14 = vld [vmem:[%s772_s1 + $0xa0] sm:$0x3]  ;;  %v517_v16 = vld [vmem:[%s772_s1 + $0x98] sm:$0xff]  ;;  %v516_v18 = vld [vmem:[%s772_s1 + $0x90] sm:$0xff] }
   0xa   :  { %198 = vperm.xlu1 %532, %v191_v4   ;;  %519 = vmatpush.msk.msra.mxu2 %vm113_vm0, %v518_v14  ;;  %v496_v15 = vld [vmem:[%s772_s1 + $0x60] sm:$0xff]  ;;  %v495_v17 = vld [vmem:[%s772_s1 + $0x58] sm:$0xff]  ;;  %v494_v19 = vld [vmem:[%s772_s1 + $0x50] sm:$0xff] }
   0xb   :  { %34 = vperm.xlu0 %531, %v29_v5   ;;  %127 = vmatpush.msra.mxu0 %v496_v15  ;;  %v63_v21 = vld [vmem:[%s772_s1 + $0x30] sm:$0x3]  ;;  %v493_v22 = vld [vmem:[%s772_s1 + $0x48] sm:$0xff]  ;;  %v514_v23 = vld [vmem:[%s772_s1 + $0x80] sm:$0xff]  ;;  %v287_v5 = vshrl.u32 %v27_v35, 7 }
   0xc   :  { %72 = vperm.xlu2 %533, %v65_v6   ;;  %251 = vmatpush.msra.mxu2 %v517_v16  ;;  %v62_v24 = vld [vmem:[%s772_s1 + $0x28] sm:$0xff]  ;;  %v492_v25 = vld [vmem:[%s772_s1 + $0x40] sm:$0xff]  ;;  %v513_v26 = vld [vmem:[%s772_s1 + $0x78] sm:$0xff] }
   0xd   :  { %128 = vmatpush.msra.mxu0 %v495_v17  ;;  %503 = vmatpush.msk.msra.mxu1 %vm113_vm0, %v63_v21  ;;  %v491_v27 = vld [vmem:[%s772_s1 + $0x38] sm:$0xff]  ;;  %v61_v28 = vld [vmem:[%s772_s1 + $0x20] sm:$0xff]  ;;  %v512_v29 = vld [vmem:[%s772_s1 + $0x70] sm:$0xff] }
   0xe   :  { %252 = vmatpush.msra.mxu2 %v516_v18  ;;  %v60_v30 = vld [vmem:[%s772_s1 + $0x18] sm:$0xff]  ;;  %v59_v31 = vld [vmem:[%s772_s1 + $0x10] sm:$0xff]  ;;  %v58_v32 = vld [vmem:[%s772_s1 + $0x8] sm:$0xff] }
   0xf   :  { %129 = vmatpush.msra.mxu0 %v494_v19  ;;  %171 = vmatpush.msra.mxu1 %v62_v24  ;;  %v57_v33 = vld [vmem:[%s772_s1] sm:$0xff]  ;;  %v367_v2 = vld [vmem:[%s774_s3 + $0x8] sm:$0x3] }
  0x10   :  { %253 = vmatpush.msra.mxu2 %v515_v20  ;;  %v366_v3 = vld [vmem:[%s774_s3] sm:$0xff]  ;;  %524 = vmatpush.msk.msra.mxu3 %vm113_vm0, %v367_v2 }
  0x11   :  { %130 = vmatpush.msra.mxu0 %v493_v22  ;;  %172 = vmatpush.msra.mxu1 %v61_v28 }
  0x12   :  { %40 = vperm.xlu1 %532, %v31_v7   ;;  %254 = vmatpush.msra.mxu2 %v514_v23 }
  0x13   :  { %201 = vperm.xlu0 %531, %v192_v8   ;;  %131 = vmatpush.msra.mxu0 %v492_v25 }
  0x14   :  { %75 = vperm.xlu2 %533, %v66_v9   ;;  %255 = vmatpush.msra.mxu2 %v513_v26  ;;  %v534_v9 = vld [vmem:[%s773_s2] ss:$0 sm:$0xff] }
  0x15   :  { %132 = vmatpush.msra.mxu0 %v491_v27  ;;  %173 = vmatpush.msra.mxu1 %v60_v30  ;;  %v290_v30 = vadd.s32 24, %v287_v5 }
  0x16   :  { %256 = vmatpush.msra.mxu2 %v512_v29  ;;  %396 = vmatpush.msra.mxu3 %v366_v3 }
  0x17   :  { %174 = vmatpush.msra.mxu1 %v59_v31 }
  0x19   :  { %175 = vmatpush.msra.mxu1 %v58_v32 }
  0x1a   :  { %43 = vperm.xlu1 %532, %v32_v10  }
  0x1b   :  { %204 = vperm.xlu0 %531, %v193_v11   ;;  %176 = vmatpush.msra.mxu1 %v57_v33  ;;  %v288_v11 = vadd.s32 8, %v287_v5 }
  0x1c   :  { %78 = vperm.xlu2 %533, %v67_v12  }
  0x1d   :  { %v302_v15 = vand.u32 15, %v288_v11 }
  0x1f   :  { %vm340_vm14 = vcmp.lt.s32.totalorder %v302_v15, 14 }
  0x5e   :  { %v38_v34 = vpop.permute.xlu2 %37 }
  0x5f   :  { %vm46_vm7 = vcmp.eq.s32.totalorder %v38_v34, %v28_v36  ;;  %v316_v34 = vand.u32 15, %v290_v30 }
  0x60   :  { %v484_v50 = vsel %vm46_vm7, 1.0, %v578_v40 }
  0x61   :  { %vm342_vm0 = vcmp.lt.s32.totalorder %v316_v34, 14 }
  0x66   :  { %v73_v37 = vpop.permute.xlu2 %72 }
  0x67   :  { %vm81_vm4 = vcmp.eq.s32.totalorder %v73_v37, %v28_v36 }
  0x68   :  { %v488_v43 = vsel %vm81_vm4, 1.0, %v578_v40 }
  0x6e   :  { %v76_v46 = vpop.permute.xlu2 %75 }
  0x6f   :  { %vm82_vm8 = vcmp.eq.s32.totalorder %v76_v46, %v28_v36 }
  0x70   :  { %v489_v51 = vsel %vm82_vm8, 1.0, %v578_v40  ;;  %vm463_vm8 = vcmask 31744  }
  0x74   :  { %v70_v38 = vpop.permute.xlu1 %69 }
  0x75   :  { %v196_v39 = vpop.permute.xlu0 %195  ;;  %vm80_vm2 = vcmp.eq.s32.totalorder %v70_v38, %v28_v36 }
  0x76   :  { %vm206_vm3 = vcmp.eq.s32.totalorder %v196_v39, %v28_v36  ;;  %v487_v41 = vsel %vm80_vm2, 1.0, %v578_v40  ;;  %v79_v54 = vpop.permute.xlu2 %78  ;;  %vm410_vm2 = vcmask 261120  }
  0x77   :  { %v508_v42 = vsel %vm206_vm3, 1.0, %v578_v40  ;;  %499 = vmatmul.msk.f32.vlgmr.msra.gmra.mxu0 %vm100_vm1, %v487_v41  ;;  %vm83_vm10 = vcmp.eq.s32.totalorder %v79_v54, %v28_v36  ;;  %v405_v54 = vld [vmem:[%s776_s5 + $0x18] sm:$0xff]  ;;  %vm434_vm3 = vcmask 25600  }
  0x78   :  { %520 = vmatmul.msk.f32.vlgmr.msra.gmra.mxu2 %vm100_vm1, %v508_v42  ;;  %v490_v56 = vsel %vm83_vm10, 1.0, %v578_v40  ;;  %426 = vmatpush.msrb.mxu3 %v405_v54 }
  0x7c   :  { %v199_v44 = vpop.permute.xlu1 %198 }
  0x7d   :  { %v35_v45 = vpop.permute.xlu0 %34  ;;  %vm207_vm5 = vcmp.eq.s32.totalorder %v199_v44, %v28_v36 }
  0x7e   :  { %vm45_vm6 = vcmp.eq.s32.totalorder %v35_v45, %v28_v36  ;;  %v509_v47 = vsel %vm207_vm5, 1.0, %v578_v40 }
  0x7f   :  { %v483_v48 = vsel %vm45_vm6, 1.0, %v578_v40  ;;  %500 = vmatmul.msk.f32.gmra.mxu0 %vm100_vm1, %v488_v43 }
  0x80   :  { %504 = vmatmul.msk.f32.vlgmr.msra.gmra.mxu1 %vm100_vm1, %v483_v48  ;;  %521 = vmatmul.msk.f32.gmra.mxu2 %vm100_vm1, %v509_v47 }
  0x84   :  { %v41_v52 = vpop.permute.xlu1 %40 }
  0x85   :  { %v202_v49 = vpop.permute.xlu0 %201  ;;  %vm47_vm11 = vcmp.eq.s32.totalorder %v41_v52, %v28_v36 }
  0x86   :  { %vm208_vm9 = vcmp.eq.s32.totalorder %v202_v49, %v28_v36  ;;  %v485_v57 = vsel %vm47_vm11, 1.0, %v578_v40 }
  0x87   :  { %v510_v53 = vsel %vm208_vm9, 1.0, %v578_v40  ;;  %501 = vmatmul.msk.f32.gmra.mxu0 %vm100_vm1, %v489_v51  ;;  %vm465_vm9 = vcmask 58368  }
  0x88   :  { %505 = vmatmul.msk.f32.gmra.mxu1 %vm100_vm1, %v484_v50  ;;  %522 = vmatmul.msk.f32.gmra.mxu2 %vm100_vm1, %v510_v53 }
  0x8c   :  { %v44_v59 = vpop.permute.xlu1 %43 }
  0x8d   :  { %v205_v55 = vpop.permute.xlu0 %204  ;;  %vm48_vm13 = vcmp.eq.s32.totalorder %v44_v59, %v28_v36 }
  0x8e   :  { %vm209_vm12 = vcmp.eq.s32.totalorder %v205_v55, %v28_v36  ;;  %v486_v60 = vsel %vm48_vm13, 1.0, %v578_v40  ;;  %v404_v55 = vld [vmem:[%s776_s5 + $0x10] sm:$0xff] }
  0x8f   :  { %v511_v58 = vsel %vm209_vm12, 1.0, %v578_v40  ;;  %502 = vmatmul.msk.f32.gmra.mxu0 %vm100_vm1, %v490_v56  ;;  %v403_v56 = vld [vmem:[%s776_s5 + $0x8] sm:$0xff]  ;;  %427 = vmatpush.msrb.mxu3 %v404_v55 }
  0x90   :  { %506 = vmatmul.msk.f32.gmra.mxu1 %vm100_vm1, %v485_v57  ;;  %523 = vmatmul.msk.f32.gmra.mxu2 %vm100_vm1, %v511_v58  ;;  %v402_v57 = vld [vmem:[%s776_s5] sm:$0xff]  ;;  %s580_s5 = smov [#allocation2]  }
  0x91   :  { %428 = vmatpush.msrb.mxu3 %v403_v56  ;;  %v535_v58 = vld [vmem:[%s775_s4] ss:$0 sm:$0xff]  ;;  %s579_s4 = smov 4  }
  0x93   :  { %429 = vmatpush.msrb.mxu3 %v402_v57 }
  0x98   :  { %507 = vmatmul.msk.f32.gmra.mxu1 %vm100_vm1, %v486_v60  ;;  %vm374_vm1 = vcmask 1041409  }
  0xf4   :  { %v134_v61 = vpop.f32.mrf.mxu0 }
  0xfb   :  { %v258_v62 = vpop.f32.mrf.mxu2 }
  0xfc   :  { %v137_v0 = vpop.f32.mrf.mxu0 }
  0xfd   :  { %v178_v63 = vpop.f32.mrf.mxu1 }
  0xfe   :  { %v179_v1 = vadd.f32 %v178_v63, %v134_v61 }
 0x100   :  { %v270_v8 = vadd.f32 %v258_v62, %v179_v1  ;;  %v536_v62 = vld [vmem:[%s777_s6] ss:$0 sm:$0xff]  ;;  %s472_s6 = sshll.u32 %s580_s5, 4  ;;  %s473_s6 = int_to_ptr.vmem [resolvable:$true] %s472_s6 }
 0x102   :  { %v278_v13 = vadd.f32 %v534_v9, %v270_v8 }
 0x103   :  { %v261_v4 = vpop.f32.mrf.mxu2 }
 0x104   :  { %v140_v14 = vpop.f32.mrf.mxu0 }
 0x105   :  { %v181_v6 = vpop.f32.mrf.mxu1 }
 0x106   :  { %v182_v7 = vadd.f32 %v181_v6, %v137_v0 }
 0x108   :  { %v271_v10 = vadd.f32 %v261_v4, %v182_v7 }
 0x10a   :  { %v279_v12 = vadd.f32 %v534_v9, %v271_v10 }
 0x10b   :  { %v264_v16 = vpop.f32.mrf.mxu2 }
 0x10c   :  { %537 = vtanh.f32 %v279_v12  ;;  %v143_v23 = vpop.f32.mrf.mxu0 }
 0x10d   :  { %v184_v17 = vpop.f32.mrf.mxu1  ;;  %539 = vtanh.f32 %v278_v13 }
 0x10e   :  { %v185_v18 = vadd.f32 %v184_v17, %v140_v14 }
 0x110   :  { %v272_v21 = vadd.f32 %v264_v16, %v185_v18 }
 0x112   :  { %v538_v19 = vpop.eup %537  ;;  %v280_v27 = vadd.f32 %v534_v9, %v272_v21 }
 0x113   :  { %v344_v20 = vsel %vm340_vm14, %v538_v19, -2.0  ;;  %v540_v22 = vpop.eup %539  ;;  %v267_v28 = vpop.f32.mrf.mxu2 }
 0x114   :  { %v349_v26 = vsel %vm347_vm15, %v344_v20, -inf  ;;  %v348_v31 = vsel %vm347_vm15, %v540_v22, -inf  ;;  %541 = vtanh.f32 %v280_v27 }
 0x115   :  { %v187_v24 = vpop.f32.mrf.mxu1  ;;  %v350_v32 = vmax.f32 %v348_v31, %v349_v26 }
 0x116   :  { %v188_v25 = vadd.f32 %v187_v24, %v143_v23 }
 0x117   :  { %v351_v35 = vrot.slane %v350_v32, 4 }
 0x118   :  { %v273_v29 = vadd.f32 %v267_v28, %v188_v25 }
 0x119   :  { %v352_v37 = vmax.f32 %v350_v32, %v351_v35 }
 0x11a   :  { %v281_v33 = vadd.f32 %v534_v9, %v273_v29  ;;  %v542_v36 = vpop.eup %541 }
 0x11b   :  { %v357_v40 = vsel %vm347_vm15, %v542_v36, -inf  ;;  %v353_v42 = vrot.slane %v352_v37, 2 }
 0x11c   :  { %543 = vtanh.f32 %v281_v33 }
 0x11d   :  { %v354_v45 = vmax.f32 %v352_v37, %v353_v42 }
 0x11f   :  { %v355_v48 = vrot.slane %v354_v45, 1 }
 0x121   :  { %v356_v51 = vmax.f32 %v354_v45, %v355_v48 }
 0x122   :  { %v544_v38 = vpop.eup %543 }
 0x123   :  { %v346_v39 = vsel %vm342_vm0, %v544_v38, -2.0 }
 0x124   :  { %v358_v41 = vsel %vm347_vm15, %v346_v39, -inf }
 0x125   :  { %v359_v43 = vmax.f32 %v357_v40, %v358_v41 }
 0x127   :  { %v360_v44 = vrot.slane %v359_v43, 4 }
 0x129   :  { %v361_v46 = vmax.f32 %v359_v43, %v360_v44 }
 0x12b   :  { %v362_v47 = vrot.slane %v361_v46, 2 }
 0x12d   :  { %v363_v49 = vmax.f32 %v361_v46, %v362_v47 }
 0x12f   :  { %v364_v50 = vrot.slane %v363_v49, 1 }
 0x131   :  { %v365_v52 = vmax.f32 %v363_v49, %v364_v50 }
 0x133   :  { %v375_v53 = vsel %vm374_vm1, %v365_v52, %v356_v51 }
 0x134   :  { %525 = vmatmul.msk.f32.vlgmr.msra.gmra.mxu3 %vm347_vm15, %v375_v53 }
 0x1b7   :  { %v398_v59 = vpop.f32.mrf.mxu3 }
 0x1b8   :  { %v399_v60 = vadd.f32 %v535_v58, %v398_v59 }
 0x1ba   :  { %545 = vtanh.f32 %v399_v60 }
 0x1c0   :  { %v546_v61 = vpop.eup %545 }
 0x1c1   :  { %526 = vmatmul.msk.f32.vlgmr.msrb.gmra.mxu3 %vm410_vm2, %v546_v61 }
 0x244   :  { %v431_v63 = vpop.f32.mrf.mxu3 }
 0x245   :  { %v432_v0 = vadd.f32 %v536_v62, %v431_v63 }
 0x247   :  { %v435_v1 = vsel %vm434_vm3, %v432_v0, -inf }
 0x248   :  { %436 = vmax.xlane.f32.xlu0 %v435_v1 }
 0x2bb   :  { %v437_v2 = vpop.xlane.xlu0 %436 }
 0x2bc   :  { %v438_v3 = vsub.f32 %v432_v0, %v437_v2 }
 0x2be   :  { %v439_v4 = vmul.f32 1.442695, %v438_v3 }
 0x2c0   :  { %547 = vpow2.f32 %v439_v4 }
 0x2c6   :  { %v548_v5 = vpop.eup %547 }
 0x2c7   :  { %v441_v6 = vsel %vm434_vm3, %v548_v5, 0.0 }
 0x2c8   :  { %442 = vadd.xlane.f32.xlu1 %v441_v6 }
 0x33b   :  { %v443_v7 = vpop.xlane.xlu1 %442 }
 0x33c   :  { %549 = vrcp.f32 %v443_v7  ;;  %v455_v11 = vand.u32 2147483648, %v443_v7  ;;  %v453_v13 = vand.u32 2147483647, %v443_v7  ;;  %vm449_vm5 = vweird.f32 %v443_v7 }
 0x33e   :  { %v456_v15 = vor.u32 1.1754944e-38, %v455_v11  ;;  %vm454_vm7 = vcmp.eq.f32.partialorder %v453_v13, 8.507059e+37 }
 0x342   :  { %v550_v8 = vpop.eup %549 }
 0x343   :  { %v445_v9 = vmul.f32 %v550_v8, %v443_v7  ;;  %vm450_vm4 = vweird.f32 %v550_v8 }
 0x344   :  { %vm451_vm6 = vmor %vm449_vm5, %vm450_vm4 }
 0x345   :  { %v446_v10 = vsub.f32 1.0, %v445_v9 }
 0x347   :  { %v447_v12 = vmul.f32 %v550_v8, %v446_v10 }
 0x349   :  { %v448_v14 = vadd.f32 %v550_v8, %v447_v12 }
 0x34b   :  { %v452_v16 = vsel %vm451_vm6, %v550_v8, %v448_v14 }
 0x34c   :  { %v457_v17 = vsel %vm454_vm7, %v456_v15, %v452_v16 }
 0x34d   :  { %v458_v18 = vmul.f32 %v548_v5, %v457_v17 }
 0x34f   :  { %460 = vrot.lane.b32.xlu2 %v458_v18, %s579_s4 }
 0x3a9   :  { %v461_v19 = vpop.permute.xlu2 %460 }
 0x3aa   :  { %v464_v20 = vsel %vm463_vm8, %v432_v0, %v461_v19 }
 0x3ab   :  { %466 = vst.msk [vmem:[#allocation2] sm:$0x3] %vm465_vm9, %v464_v20 }
 0x3ac   :  { %477 = dma.vmem_to_hbm [thread:$0]  %s473_s6, 32, %s475_s12, [#allocation3]  }
 0x3ad   :  { %575 = dma.done.wait [#allocation3], 32  }
 0x3ae   :  { %576 = vsyncadd [#allocation3], 4294967264 }
 0x3af   :  { %482 = vsyncpa [#allocation3], 1 }

</bundles_post_ra>
